<compile_context>
chip_gen: v7x
topology: tpu7x:2x2x1
jax: 0.10.0
libtpu: 0.0.40
codegen_flags: <defaults>
</compile_context>

<pallas_src>
import functools

import jax
import jax.numpy as jnp
from jax.experimental import pallas as pl
from jax.experimental.pallas import tpu as pltpu

IN_DIM = 100
HID_DIM = 250
OUT_DIM = 30

IN_PAD = 128           # 100 zero-padded -> lane-dense x tile & clean MXU K pass
HID_PAD = 256          # 250 zero-padded -> (8,128)-aligned hidden tiles
OUT_PAD = 128          # 30 zero-padded  -> unmasked lane-dense vst on the output


def _round_up(n, m):
    return ((n + m - 1) // m) * m


def net100_kernel(x_ref,
                  w1_ref, b1_ref,
                  w2_ref, b2_ref,
                  w3_ref, b3_ref,
                  w4_ref, b4_ref,
                  o_ref):
    # fc1 + ReLU  (bf16 x bf16 -> f32 accumulate on the MXU; ReLU/bias in f32 on VPU)
    h = jnp.dot(x_ref[...], w1_ref[...], preferred_element_type=jnp.float32)
    h = jnp.maximum(h + b1_ref[...], 0.0).astype(jnp.bfloat16)
    # fc2 + ReLU
    h = jnp.dot(h, w2_ref[...], preferred_element_type=jnp.float32)
    h = jnp.maximum(h + b2_ref[...], 0.0).astype(jnp.bfloat16)
    # fc3 + ReLU
    h = jnp.dot(h, w3_ref[...], preferred_element_type=jnp.float32)
    h = jnp.maximum(h + b3_ref[...], 0.0).astype(jnp.bfloat16)
    # fc4 (no activation), output in f32, 128-lane padded
    h = jnp.dot(h, w4_ref[...], preferred_element_type=jnp.float32)
    o_ref[...] = (h + b4_ref[...]).astype(o_ref.dtype)


@functools.partial(jax.jit, static_argnames=("block_b",))
def net100_forward(x, params, *, block_b=1024):
    """x: (B, 100) f32; params: prepared (padded, bf16-weight) parameter dict."""
    B = x.shape[0]
    w1, b1 = params["w1"], params["b1"]
    w2, b2 = params["w2"], params["b2"]
    w3, b3 = params["w3"], params["b3"]
    w4, b4 = params["w4"], params["b4"]

    # Batch tile selection:
    #  * small batch -> single tile rounded up to 16 rows (native bf16 packing)
    #  * large batch -> block_b-row tiles, but capped so nb >= 2 (megacore on v7x)
    if B >= block_b:
        tb = min(block_b, _round_up(-(-B // 2), 256))
    else:
        tb = _round_up(B, 16)
    pb = _round_up(B, tb)
    nb = pb // tb

    # Pad batch rows and feature lanes (100 -> 128) and cast to bf16 in one shot.
    xb = jnp.pad(x, ((0, pb - B), (0, IN_PAD - IN_DIM))).astype(jnp.bfloat16)

    # Constant index_map -> weight/bias blocks stay VMEM-resident across steps.
    const = lambda shape: pl.BlockSpec(shape, lambda i: (0,) * len(shape))

    flops = 2 * pb * (IN_PAD * HID_PAD + 2 * HID_PAD * HID_PAD + HID_PAD * OUT_PAD)
    bytes_accessed = (
        xb.size * xb.dtype.itemsize
        + sum(p.size * p.dtype.itemsize for p in (w1, b1, w2, b2, w3, b3, w4, b4))
        + pb * OUT_PAD * 4)

    out = pl.pallas_call(
        net100_kernel,
        out_shape=jax.ShapeDtypeStruct((pb, OUT_PAD), jnp.float32),
        grid=(nb,),
        in_specs=[
            pl.BlockSpec((tb, IN_PAD), lambda i: (i, 0)),   # x streams with i
            const(w1.shape), const(b1.shape),
            const(w2.shape), const(b2.shape),
            const(w3.shape), const(b3.shape),
            const(w4.shape), const(b4.shape),
        ],
        out_specs=pl.BlockSpec((tb, OUT_PAD), lambda i: (i, 0)),
        compiler_params=pltpu.CompilerParams(
            dimension_semantics=("parallel",)),             # megacore split on v7x
        cost_estimate=pl.CostEstimate(
            flops=flops, transcendentals=0, bytes_accessed=bytes_accessed),
    )(xb, w1, b1, w2, b2, w3, b3, w4, b4)

    return out[:B, :OUT_DIM]


def init_params(key):
    """PyTorch Linear default init U(-1/sqrt(fan_in), +1/sqrt(fan_in)); weights stored
    pre-transposed as (in_features, out_features), biases as (1, out_features)."""
    dims = [(IN_DIM, HID_DIM), (HID_DIM, HID_DIM), (HID_DIM, HID_DIM), (HID_DIM, OUT_DIM)]
    params = {}
    keys = jax.random.split(key, 2 * len(dims))
    for i, (fan_in, fan_out) in enumerate(dims):
        bound = 1.0 / jnp.sqrt(float(fan_in))
        w = jax.random.uniform(keys[2 * i], (fan_in, fan_out), jnp.float32,
                               minval=-bound, maxval=bound)
        b = jax.random.uniform(keys[2 * i + 1], (1, fan_out), jnp.float32,
                               minval=-bound, maxval=bound)
        params[f"w{i + 1}"] = w
        params[f"b{i + 1}"] = b
    return params


def prepare_params(params):
    """Zero-pad 100->128 (input), 250->256 (hidden), 30->128 (output) and cast
    weights to bf16. Padded rows/cols are zero, so the padded network computes
    exactly the same function as the unpadded one on the original dims."""
    hid_pad = HID_PAD - HID_DIM
    in_pad = IN_PAD - IN_DIM
    out_pad = OUT_PAD - OUT_DIM
    w1 = jnp.pad(params["w1"], ((0, in_pad), (0, hid_pad)))
    b1 = jnp.pad(params["b1"], ((0, 0), (0, hid_pad)))
    w2 = jnp.pad(params["w2"], ((0, hid_pad), (0, hid_pad)))
    b2 = jnp.pad(params["b2"], ((0, 0), (0, hid_pad)))
    w3 = jnp.pad(params["w3"], ((0, hid_pad), (0, hid_pad)))
    b3 = jnp.pad(params["b3"], ((0, 0), (0, hid_pad)))
    w4 = jnp.pad(params["w4"], ((0, hid_pad), (0, out_pad)))
    b4 = jnp.pad(params["b4"], ((0, 0), (0, out_pad)))
    return {
        "w1": w1.astype(jnp.bfloat16), "b1": b1,
        "w2": w2.astype(jnp.bfloat16), "b2": b2,
        "w3": w3.astype(jnp.bfloat16), "b3": b3,
        "w4": w4.astype(jnp.bfloat16), "b4": b4,
    }


def net100_reference(x, p):
    """Pure-JAX reference mirroring the kernel's bf16-input / f32-accumulate path.
    NOTE: inputs/activations are bf16 (f32 accumulate), so results match the f32
    PyTorch module only to ~1e-2 — acceptable for this drift-detector MLP."""
    xb = jnp.pad(x, ((0, 0), (0, IN_PAD - IN_DIM))).astype(jnp.bfloat16)
    h = jnp.dot(xb, p["w1"], preferred_element_type=jnp.float32)
    h = jnp.maximum(h + p["b1"], 0.0).astype(jnp.bfloat16)
    h = jnp.dot(h, p["w2"], preferred_element_type=jnp.float32)
    h = jnp.maximum(h + p["b2"], 0.0).astype(jnp.bfloat16)
    h = jnp.dot(h, p["w3"], preferred_element_type=jnp.float32)
    h = jnp.maximum(h + p["b3"], 0.0).astype(jnp.bfloat16)
    h = jnp.dot(h, p["w4"], preferred_element_type=jnp.float32)
    return (h + p["b4"])[:, :OUT_DIM]


if __name__ == "__main__":
    key = jax.random.PRNGKey(0)
    k_params, k_x = jax.random.split(key)
    raw_params = init_params(k_params)
    params = prepare_params(raw_params)

    batch = 16  # small demo batch; wrapper streams large batches at up to 1024 rows/tile
    x = jax.random.normal(k_x, (batch, IN_DIM), jnp.float32)

    out = net100_forward(x, params)
    out = jax.block_until_ready(out)

    ref = net100_reference(x, params)
    assert out.shape == (batch, OUT_DIM), out.shape
    assert jnp.allclose(out, ref, atol=1e-2, rtol=1e-2), (
        f"mismatch vs reference: max abs diff {jnp.max(jnp.abs(out - ref))}")

    print("KERNEL_OK")
</pallas_src>

<mosaic_0001>
module attributes {stable_mosaic.version = 11 : i64} {
  func.func @net100_kernel(%arg0: i32, %arg1: memref<16x128xbf16, #tpu.memory_space<vmem>>, %arg2: memref<128x256xbf16, #tpu.memory_space<vmem>>, %arg3: memref<1x256xf32, #tpu.memory_space<vmem>>, %arg4: memref<256x256xbf16, #tpu.memory_space<vmem>>, %arg5: memref<1x256xf32, #tpu.memory_space<vmem>>, %arg6: memref<256x256xbf16, #tpu.memory_space<vmem>>, %arg7: memref<1x256xf32, #tpu.memory_space<vmem>>, %arg8: memref<256x128xbf16, #tpu.memory_space<vmem>>, %arg9: memref<1x128xf32, #tpu.memory_space<vmem>>, %arg10: memref<16x128xf32, #tpu.memory_space<vmem>>) attributes {dimension_semantics = [#tpu.dimension_semantics<parallel>], iteration_bounds = array<i64: 1>, scalar_prefetch = 0 : i64, scratch_operands = 0 : i64, tpu.core_type = #tpu.core_type<tc>, window_params = [{transform_indices = @transform_0, window_bounds = array<i64: 16, 128>}, {pipeline_mode = #tpu.pipeline_mode<synchronous>, transform_indices = @transform_1, window_bounds = array<i64: 128, 256>}, {pipeline_mode = #tpu.pipeline_mode<synchronous>, transform_indices = @transform_2, window_bounds = array<i64: 1, 256>}, {pipeline_mode = #tpu.pipeline_mode<synchronous>, transform_indices = @transform_3, window_bounds = array<i64: 256, 256>}, {pipeline_mode = #tpu.pipeline_mode<synchronous>, transform_indices = @transform_4, window_bounds = array<i64: 1, 256>}, {pipeline_mode = #tpu.pipeline_mode<synchronous>, transform_indices = @transform_5, window_bounds = array<i64: 256, 256>}, {pipeline_mode = #tpu.pipeline_mode<synchronous>, transform_indices = @transform_6, window_bounds = array<i64: 1, 256>}, {pipeline_mode = #tpu.pipeline_mode<synchronous>, transform_indices = @transform_7, window_bounds = array<i64: 256, 128>}, {pipeline_mode = #tpu.pipeline_mode<synchronous>, transform_indices = @transform_8, window_bounds = array<i64: 1, 128>}, {transform_indices = @transform_9, window_bounds = array<i64: 16, 128>}]} {
    %c0 = arith.constant 0 : index
    %c0_0 = arith.constant 0 : index
    %0 = vector.load %arg1[%c0, %c0_0] : memref<16x128xbf16, #tpu.memory_space<vmem>>, vector<16x128xbf16>
    %c0_1 = arith.constant 0 : index
    %c0_2 = arith.constant 0 : index
    %1 = vector.load %arg2[%c0_1, %c0_2] : memref<128x256xbf16, #tpu.memory_space<vmem>>, vector<128x256xbf16>
    %cst = arith.constant dense<0.000000e+00> : vector<16x256xf32>
    %2 = tpu.matmul %0, %1, %cst {dimension_numbers = #tpu.dot_dimension_numbers<[1], [0], [0], [1], [0, 0, 1, 1], [], []>} : vector<16x128xbf16>, vector<128x256xbf16>, vector<16x256xf32> -> vector<16x256xf32>
    %c0_3 = arith.constant 0 : index
    %c0_4 = arith.constant 0 : index
    %3 = vector.load %arg3[%c0_3, %c0_4] : memref<1x256xf32, #tpu.memory_space<vmem>>, vector<1x256xf32>
    %4 = vector.broadcast %3 : vector<1x256xf32> to vector<16x256xf32>
    %5 = arith.addf %2, %4 : vector<16x256xf32>
    %cst_5 = arith.constant 0.000000e+00 : f32
    %6 = vector.broadcast %cst_5 : f32 to vector<16x256xf32>
    %7 = arith.maximumf %5, %6 : vector<16x256xf32>
    %8 = arith.truncf %7 : vector<16x256xf32> to vector<16x256xbf16>
    %c0_6 = arith.constant 0 : index
    %c0_7 = arith.constant 0 : index
    %9 = vector.load %arg4[%c0_6, %c0_7] : memref<256x256xbf16, #tpu.memory_space<vmem>>, vector<256x256xbf16>
    %cst_8 = arith.constant dense<0.000000e+00> : vector<16x256xf32>
    %10 = tpu.matmul %8, %9, %cst_8 {dimension_numbers = #tpu.dot_dimension_numbers<[1], [0], [0], [1], [0, 0, 1, 1], [], []>} : vector<16x256xbf16>, vector<256x256xbf16>, vector<16x256xf32> -> vector<16x256xf32>
    %c0_9 = arith.constant 0 : index
    %c0_10 = arith.constant 0 : index
    %11 = vector.load %arg5[%c0_9, %c0_10] : memref<1x256xf32, #tpu.memory_space<vmem>>, vector<1x256xf32>
    %12 = vector.broadcast %11 : vector<1x256xf32> to vector<16x256xf32>
    %13 = arith.addf %10, %12 : vector<16x256xf32>
    %cst_11 = arith.constant 0.000000e+00 : f32
    %14 = vector.broadcast %cst_11 : f32 to vector<16x256xf32>
    %15 = arith.maximumf %13, %14 : vector<16x256xf32>
    %16 = arith.truncf %15 : vector<16x256xf32> to vector<16x256xbf16>
    %c0_12 = arith.constant 0 : index
    %c0_13 = arith.constant 0 : index
    %17 = vector.load %arg6[%c0_12, %c0_13] : memref<256x256xbf16, #tpu.memory_space<vmem>>, vector<256x256xbf16>
    %cst_14 = arith.constant dense<0.000000e+00> : vector<16x256xf32>
    %18 = tpu.matmul %16, %17, %cst_14 {dimension_numbers = #tpu.dot_dimension_numbers<[1], [0], [0], [1], [0, 0, 1, 1], [], []>} : vector<16x256xbf16>, vector<256x256xbf16>, vector<16x256xf32> -> vector<16x256xf32>
    %c0_15 = arith.constant 0 : index
    %c0_16 = arith.constant 0 : index
    %19 = vector.load %arg7[%c0_15, %c0_16] : memref<1x256xf32, #tpu.memory_space<vmem>>, vector<1x256xf32>
    %20 = vector.broadcast %19 : vector<1x256xf32> to vector<16x256xf32>
    %21 = arith.addf %18, %20 : vector<16x256xf32>
    %cst_17 = arith.constant 0.000000e+00 : f32
    %22 = vector.broadcast %cst_17 : f32 to vector<16x256xf32>
    %23 = arith.maximumf %21, %22 : vector<16x256xf32>
    %24 = arith.truncf %23 : vector<16x256xf32> to vector<16x256xbf16>
    %c0_18 = arith.constant 0 : index
    %c0_19 = arith.constant 0 : index
    %25 = vector.load %arg8[%c0_18, %c0_19] : memref<256x128xbf16, #tpu.memory_space<vmem>>, vector<256x128xbf16>
    %cst_20 = arith.constant dense<0.000000e+00> : vector<16x128xf32>
    %26 = tpu.matmul %24, %25, %cst_20 {dimension_numbers = #tpu.dot_dimension_numbers<[1], [0], [0], [1], [0, 0, 1, 1], [], []>} : vector<16x256xbf16>, vector<256x128xbf16>, vector<16x128xf32> -> vector<16x128xf32>
    %c0_21 = arith.constant 0 : index
    %c0_22 = arith.constant 0 : index
    %27 = vector.load %arg9[%c0_21, %c0_22] : memref<1x128xf32, #tpu.memory_space<vmem>>, vector<1x128xf32>
    %28 = vector.broadcast %27 : vector<1x128xf32> to vector<16x128xf32>
    %29 = arith.addf %26, %28 : vector<16x128xf32>
    %c0_23 = arith.constant 0 : index
    %c0_24 = arith.constant 0 : index
    %30 = vector.load %arg10[%c0_23, %c0_24] : memref<16x128xf32, #tpu.memory_space<vmem>>, vector<16x128xf32>
    tpu.vector_store %arg10[%c0_23, %c0_24], %29 {strides = array<i32>} : memref<16x128xf32, #tpu.memory_space<vmem>>, vector<16x128xf32>,
    return
  }
  func.func @transform_0(%arg0: i32) -> (i32, i32) {
    %c0_i32 = arith.constant 0 : i32
    %c0_i32_0 = arith.constant 0 : i32
    return %arg0, %c0_i32 : i32, i32
  }
  func.func @transform_1(%arg0: i32) -> (i32, i32) {
    %c0_i32 = arith.constant 0 : i32
    %c0_i32_0 = arith.constant 0 : i32
    %c0_i32_1 = arith.constant 0 : i32
    return %c0_i32, %c0_i32_0 : i32, i32
  }
  func.func @transform_2(%arg0: i32) -> (i32, i32) {
    %c0_i32 = arith.constant 0 : i32
    %c0_i32_0 = arith.constant 0 : i32
    %c0_i32_1 = arith.constant 0 : i32
    return %c0_i32, %c0_i32_0 : i32, i32
  }
  func.func @transform_3(%arg0: i32) -> (i32, i32) {
    %c0_i32 = arith.constant 0 : i32
    %c0_i32_0 = arith.constant 0 : i32
    %c0_i32_1 = arith.constant 0 : i32
    return %c0_i32, %c0_i32_0 : i32, i32
  }
  func.func @transform_4(%arg0: i32) -> (i32, i32) {
    %c0_i32 = arith.constant 0 : i32
    %c0_i32_0 = arith.constant 0 : i32
    %c0_i32_1 = arith.constant 0 : i32
    return %c0_i32, %c0_i32_0 : i32, i32
  }
  func.func @transform_5(%arg0: i32) -> (i32, i32) {
    %c0_i32 = arith.constant 0 : i32
    %c0_i32_0 = arith.constant 0 : i32
    %c0_i32_1 = arith.constant 0 : i32
    return %c0_i32, %c0_i32_0 : i32, i32
  }
  func.func @transform_6(%arg0: i32) -> (i32, i32) {
    %c0_i32 = arith.constant 0 : i32
    %c0_i32_0 = arith.constant 0 : i32
    %c0_i32_1 = arith.constant 0 : i32
    return %c0_i32, %c0_i32_0 : i32, i32
  }
  func.func @transform_7(%arg0: i32) -> (i32, i32) {
    %c0_i32 = arith.constant 0 : i32
    %c0_i32_0 = arith.constant 0 : i32
    %c0_i32_1 = arith.constant 0 : i32
    return %c0_i32, %c0_i32_0 : i32, i32
  }
  func.func @transform_8(%arg0: i32) -> (i32, i32) {
    %c0_i32 = arith.constant 0 : i32
    %c0_i32_0 = arith.constant 0 : i32
    %c0_i32_1 = arith.constant 0 : i32
    return %c0_i32, %c0_i32_0 : i32, i32
  }
  func.func @transform_9(%arg0: i32) -> (i32, i32) {
    %c0_i32 = arith.constant 0 : i32
    %c0_i32_0 = arith.constant 0 : i32
    return %arg0, %c0_i32 : i32, i32
  }
}

</mosaic_0001>

<bundles_post_ra>
// kernel: net100_forward.1
= control target key start
LH: loop header
LB: loop body
LE: loop exit
PB: predicated region body
PF: predicated region fallthrough
CT: control target
= control target key end

     0   :  { %14 = vsyncpa [#allocation3], 0  ;;  %s1513_s0 = inlined_call_operand.vmem [shape: bf16[16,128], index: 0, kind: input, shape index: {}]   ;;  %s1514_s1 = inlined_call_operand.hbm [shape: bf16[128,256], index: 1, kind: input, shape index: {}]   ;;  %s1515_s2 = inlined_call_operand.vmem [shape: f32[1,256], index: 2, kind: input, shape index: {}]   ;;  %s1516_s3 = inlined_call_operand.hbm [shape: bf16[256,256], index: 3, kind: input, shape index: {}]   ;;  %s1517_s4 = inlined_call_operand.vmem [shape: f32[1,256], index: 4, kind: input, shape index: {}]   ;;  %s1518_s5 = inlined_call_operand.hbm [shape: bf16[256,256], index: 5, kind: input, shape index: {}]   ;;  %s1519_s6 = inlined_call_operand.vmem [shape: f32[1,256], index: 6, kind: input, shape index: {}]   ;;  %s1520_s7 = inlined_call_operand.hbm [shape: bf16[256,128], index: 7, kind: input, shape index: {}]   ;;  %s1521_s8 = inlined_call_operand.vmem [shape: f32[1,128], index: 8, kind: input, shape index: {}]   ;;  %s1522_s9 = inlined_call_operand.hbm [shape: f32[16,128], index: 9, kind: output, shape index: {}]  }
   0x1   :  { %15 = vsyncpa [#allocation6], 0 }
   0x2   :  { %16 = vsyncpa [#allocation9], 0 }
   0x3   :  { %17 = vsyncpa [#allocation4], 0  ;;  %s1342_s30 = smov [#allocation5]   ;;  %s1343_s11 = smov [#allocation2]  }
   0x4   :  { %s39_s10 = sshll.u32 %s1342_s30, 4  ;;  %s25_s12 = sshll.u32 %s1343_s11, 4  ;;  %s40_s10 = int_to_ptr.vmem [resolvable:$true] %s39_s10  ;;  %s1402_s12 = int_to_ptr.vmem [resolvable:$true] %s25_s12 }
   0x5   :  { %s1224_s15 = scalar_lea.hbm %s1516_s3, 4096 }
   0x6   :  { %p1225_p0 = scmp.ne.s32.totalorder %s1516_s3, %s1224_s15  ;;  %p1228_p1 = scmp.lt.u32.totalorder %s1224_s15, %s1516_s3 }
   0x8   :  { %p1230_p2 = pnand %p1228_p1, %p1225_p0 }
   0xa   :  { %1233 = shalt.err (!%p1230_p2)
}
   0xb   :  { %s1234_s20 = scalar_lea.vmem %s40_s10, 4096  ;;  %p1239_p4 = scmp.lt.s32.totalorder %s40_s10, %s40_s10 }
   0xc   :  { %p1235_p3 = scmp.ne.s32.totalorder %s40_s10, %s1234_s20  ;;  %p1240_p5 = scmp.lt.s32.totalorder %s1234_s20, %s1234_s20 }
   0xe   :  { %p1241_p6 = por %p1240_p5, %p1239_p4 }
  0x10   :  { %p1242_p7 = pnand %p1241_p6, %p1235_p3 }
  0x12   :  { %1245 = shalt.err (!%p1242_p7)
}
  0x13   :  { %s1344_s21 = smov 128   ;;  %s1345_s22 = smov 8  }
  0x14   :  { %45 = dma.hbm_to_vmem [thread:$0]  %s1516_s3, 4096, %s40_s10, [#allocation6], %s1344_s21, %s1344_s21, %s1345_s22  }
  0x15   :  { %s1246_s27 = scalar_lea.hbm %s1514_s1, 2048 }
  0x16   :  { %p1247_p8 = scmp.ne.s32.totalorder %s1514_s1, %s1246_s27  ;;  %p1250_p9 = scmp.lt.u32.totalorder %s1246_s27, %s1514_s1 }
  0x18   :  { %p1252_p10 = pnand %p1250_p9, %p1247_p8 }
  0x1a   :  { %1255 = shalt.err (!%p1252_p10)
}
  0x1b   :  { %s1256_s13 = scalar_lea.vmem %s1402_s12, 2048  ;;  %p1261_p12 = scmp.lt.s32.totalorder %s1402_s12, %s1402_s12 }
  0x1c   :  { %p1257_p11 = scmp.ne.s32.totalorder %s1402_s12, %s1256_s13  ;;  %p1262_p13 = scmp.lt.s32.totalorder %s1256_s13, %s1256_s13 }
  0x1e   :  { %p1263_p0 = por %p1262_p13, %p1261_p12 }
  0x20   :  { %p1264_p1 = pnand %p1263_p0, %p1257_p11 }
  0x22   :  { %1267 = shalt.err (!%p1264_p1)
}
  0x23   :  { %31 = dma.hbm_to_vmem [thread:$0]  %s1514_s1, 2048, %s1402_s12, [#allocation3], %s1344_s21, %s1344_s21, %s1345_s22  }
  0x24   :  { %s1346_s14 = smov [#allocation7]   ;;  %s1347_s16 = smov [#allocation8]  }
  0x25   :  { %s53_s15 = sshll.u32 %s1346_s14, 4  ;;  %s67_s17 = sshll.u32 %s1347_s16, 4  ;;  %s54_s15 = int_to_ptr.vmem [resolvable:$true] %s53_s15  ;;  %s1439_s17 = int_to_ptr.vmem [resolvable:$true] %s67_s17 }
  0x26   :  { %s1268_s20 = scalar_lea.hbm %s1518_s5, 4096 }
  0x27   :  { %p1269_p2 = scmp.ne.s32.totalorder %s1518_s5, %s1268_s20  ;;  %p1272_p3 = scmp.lt.u32.totalorder %s1268_s20, %s1518_s5 }
  0x29   :  { %p1274_p4 = pnand %p1272_p3, %p1269_p2 }
  0x2b   :  { %1277 = shalt.err (!%p1274_p4)
}
  0x2c   :  { %s1278_s1 = scalar_lea.vmem %s54_s15, 4096  ;;  %p1283_p6 = scmp.lt.s32.totalorder %s54_s15, %s54_s15 }
  0x2d   :  { %p1279_p5 = scmp.ne.s32.totalorder %s54_s15, %s1278_s1  ;;  %p1284_p7 = scmp.lt.s32.totalorder %s1278_s1, %s1278_s1 }
  0x2f   :  { %p1285_p8 = por %p1284_p7, %p1283_p6 }
  0x31   :  { %p1286_p9 = pnand %p1285_p8, %p1279_p5 }
  0x33   :  { %1289 = shalt.err (!%p1286_p9)
}
  0x34   :  { %59 = dma.hbm_to_vmem [thread:$0]  %s1518_s5, 4096, %s54_s15, [#allocation6], %s1344_s21, %s1344_s21, %s1345_s22  }
  0x35   :  { %s1290_s30 = scalar_lea.hbm %s1520_s7, 2048 }
  0x36   :  { %p1291_p10 = scmp.ne.s32.totalorder %s1520_s7, %s1290_s30  ;;  %p1294_p11 = scmp.lt.u32.totalorder %s1290_s30, %s1520_s7 }
  0x38   :  { %p1296_p12 = pnand %p1294_p11, %p1291_p10 }
  0x3a   :  { %1299 = shalt.err (!%p1296_p12)
}
  0x3b   :  { %s1300_s14 = scalar_lea.vmem %s1439_s17, 2048  ;;  %p1305_p0 = scmp.lt.s32.totalorder %s1439_s17, %s1439_s17 }
  0x3c   :  { %p1301_p13 = scmp.ne.s32.totalorder %s1439_s17, %s1300_s14  ;;  %p1306_p1 = scmp.lt.s32.totalorder %s1300_s14, %s1300_s14 }
  0x3e   :  { %p1307_p2 = por %p1306_p1, %p1305_p0 }
  0x40   :  { %p1308_p3 = pnand %p1307_p2, %p1301_p13 }
  0x42   :  { %1311 = shalt.err (!%p1308_p3)
}
  0x43   :  { %s1348_s5 = smov 64   ;;  %s1349_s15 = smov 4  }
  0x44   :  { %73 = dma.hbm_to_vmem [thread:$0]  %s1520_s7, 2048, %s1439_s17, [#allocation9], %s1348_s5, %s1348_s5, %s1349_s15  }
  0x45   :  { %1334 = dma.done.wait [#allocation3], 2048  }
  0x46   :  { %1335 = vsyncadd [#allocation3], 4294965248 }
  0x47   :  { %1336 = dma.done.wait [#allocation6], 8192  }
  0x48   :  { %1337 = vsyncadd [#allocation6], 4294959104 }
  0x49   :  { %1338 = dma.done.wait [#allocation9], 2048  }
  0x4a   :  { %1339 = vsyncadd [#allocation9], 4294965248  ;;  %v1350_v0 = vmov 0   ;;  %v1087_v1 = vld [vmem:[#allocation2 + $0x4] ss:$8 sps:$4 sm:$0xff]   ;;  %s1351_s25 = smov [#allocation10]  }
  0x4b   :  { %237 = vmatprep.mubr.bf16.mxu0 %v1350_v0  ;;  %v1089_v2 = vld [vmem:[#allocation2] ss:$8 sps:$4 sm:$0xff]   ;;  %205 = vmatprep.subr.bf16.mxu0 %v1087_v1  ;;  %v1090_v3 = vld [vmem:[#allocation2 + $0x14] ss:$8 sps:$4 sm:$0xff]   ;;  %v1092_v4 = vld [vmem:[#allocation2 + $0x10] ss:$8 sps:$4 sm:$0xff]  }
  0x4c   :  { %206 = vmatpush1.bf16.msra.mxu0 %v1089_v2  ;;  %v1093_v5 = vld [vmem:[#allocation2 + $0x24] ss:$8 sps:$4 sm:$0xff]   ;;  %v1095_v6 = vld [vmem:[#allocation2 + $0x20] ss:$8 sps:$4 sm:$0xff]   ;;  %v1096_v7 = vld [vmem:[#allocation2 + $0x34] ss:$8 sps:$4 sm:$0xff]  }
  0x4d   :  { %207 = vmatprep.subr.bf16.mxu0 %v1090_v3  ;;  %v1098_v8 = vld [vmem:[#allocation2 + $0x30] ss:$8 sps:$4 sm:$0xff]   ;;  %v1099_v9 = vld [vmem:[#allocation2 + $0x44] ss:$8 sps:$4 sm:$0xff]   ;;  %v1114_v11 = vld [vmem:[#allocation5] ss:$8 sps:$4 sm:$0xff]  }
  0x4e   :  { %v1112_v10 = vld [vmem:[#allocation5 + $0x4] ss:$8 sps:$4 sm:$0xff]   ;;  %v1115_v12 = vld [vmem:[#allocation5 + $0x14] ss:$8 sps:$4 sm:$0xff]   ;;  %v1101_v13 = vld [vmem:[#allocation2 + $0x40] ss:$8 sps:$4 sm:$0xff]  }
  0x4f   :  { %458 = vmatprep.subr.bf16.mxu1 %v1112_v10  ;;  %v1117_v14 = vld [vmem:[#allocation5 + $0x10] ss:$8 sps:$4 sm:$0xff]   ;;  %v1102_v15 = vld [vmem:[#allocation2 + $0x54] ss:$8 sps:$4 sm:$0xff]   ;;  %v1118_v16 = vld [vmem:[#allocation5 + $0x24] ss:$8 sps:$4 sm:$0xff]  }
  0x50   :  { %208 = vmatpush1.bf16.msra.mxu0 %v1092_v4  ;;  %459 = vmatpush1.bf16.msra.mxu1 %v1114_v11  ;;  %v1104_v17 = vld [vmem:[#allocation2 + $0x50] ss:$8 sps:$4 sm:$0xff]   ;;  %v1120_v18 = vld [vmem:[#allocation5 + $0x20] ss:$8 sps:$4 sm:$0xff]   ;;  %v1105_v19 = vld [vmem:[#allocation2 + $0x64] ss:$8 sps:$4 sm:$0xff]  }
  0x51   :  { %209 = vmatprep.subr.bf16.mxu0 %v1093_v5  ;;  %460 = vmatprep.subr.bf16.mxu1 %v1115_v12  ;;  %v1121_v20 = vld [vmem:[#allocation5 + $0x34] ss:$8 sps:$4 sm:$0xff]   ;;  %v1107_v21 = vld [vmem:[#allocation2 + $0x60] ss:$8 sps:$4 sm:$0xff]   ;;  %v1123_v22 = vld [vmem:[#allocation5 + $0x30] ss:$8 sps:$4 sm:$0xff]  }
  0x52   :  { %v1108_v23 = vld [vmem:[#allocation2 + $0x74] ss:$8 sps:$4 sm:$0xff]   ;;  %v1124_v24 = vld [vmem:[#allocation5 + $0x44] ss:$8 sps:$4 sm:$0xff]   ;;  %v1110_v25 = vld [vmem:[#allocation2 + $0x70] ss:$8 sps:$4 sm:$0xff]  }
  0x53   :  { %v1126_v26 = vld [vmem:[#allocation5 + $0x40] ss:$8 sps:$4 sm:$0xff]   ;;  %v1127_v28 = vld [vmem:[#allocation5 + $0x54] ss:$8 sps:$4 sm:$0xff]   ;;  %v1129_v29 = vld [vmem:[#allocation5 + $0x50] ss:$8 sps:$4 sm:$0xff]  }
  0x54   :  { %210 = vmatpush1.bf16.msra.mxu0 %v1095_v6  ;;  %461 = vmatpush1.bf16.msra.mxu1 %v1117_v14  ;;  %v1111_v27 = vld [vmem:[%s1513_s0] sm:$0xff]   ;;  %v1133_v32 = vld [vmem:[#allocation5 + $0x74] ss:$8 sps:$4 sm:$0xff]   ;;  %v1135_v33 = vld [vmem:[#allocation5 + $0x70] ss:$8 sps:$4 sm:$0xff]   ;;  %v109_v14 = vlaneseq  ;;  %s943_s26 = sshll.u32 %s1351_s25, 4  ;;  %s944_s26 = int_to_ptr.vmem [resolvable:$true] %s943_s26 }
  0x55   :  { %211 = vmatprep.subr.bf16.mxu0 %v1096_v7  ;;  %462 = vmatprep.subr.bf16.mxu1 %v1118_v16  ;;  %v1130_v30 = vld [vmem:[#allocation5 + $0x64] ss:$8 sps:$4 sm:$0xff]   ;;  %v1132_v31 = vld [vmem:[#allocation5 + $0x60] ss:$8 sps:$4 sm:$0xff]   ;;  %v1139_v36 = vld [vmem:[#allocation5 + $0x94] ss:$8 sps:$4 sm:$0xff]   ;;  %p1317_p5 = scmp.lt.s32.totalorder %s944_s26, %s944_s26 }
  0x56   :  { %v1136_v34 = vld [vmem:[#allocation5 + $0x84] ss:$8 sps:$4 sm:$0xff]   ;;  %v1138_v35 = vld [vmem:[#allocation5 + $0x80] ss:$8 sps:$4 sm:$0xff]   ;;  %v1141_v37 = vld [vmem:[#allocation5 + $0x90] ss:$8 sps:$4 sm:$0xff]  }
  0x57   :  { %v1142_v38 = vld [vmem:[#allocation5 + $0xa4] ss:$8 sps:$4 sm:$0xff]   ;;  %v1144_v39 = vld [vmem:[#allocation5 + $0xa0] ss:$8 sps:$4 sm:$0xff]   ;;  %v1145_v40 = vld [vmem:[#allocation5 + $0xb4] ss:$8 sps:$4 sm:$0xff]  }
  0x58   :  { %212 = vmatpush1.bf16.msra.mxu0 %v1098_v8  ;;  %463 = vmatpush1.bf16.msra.mxu1 %v1120_v18  ;;  %v1147_v41 = vld [vmem:[#allocation5 + $0xb0] ss:$8 sps:$4 sm:$0xff]   ;;  %v1148_v42 = vld [vmem:[#allocation5 + $0xc4] ss:$8 sps:$4 sm:$0xff]   ;;  %v1150_v43 = vld [vmem:[#allocation5 + $0xc0] ss:$8 sps:$4 sm:$0xff]  }
  0x59   :  { %213 = vmatprep.subr.bf16.mxu0 %v1099_v9  ;;  %464 = vmatprep.subr.bf16.mxu1 %v1121_v20  ;;  %v1151_v44 = vld [vmem:[#allocation5 + $0xd4] ss:$8 sps:$4 sm:$0xff]   ;;  %v1153_v45 = vld [vmem:[#allocation5 + $0xd0] ss:$8 sps:$4 sm:$0xff]   ;;  %v1154_v46 = vld [vmem:[#allocation5 + $0xe4] ss:$8 sps:$4 sm:$0xff]  }
  0x5a   :  { %v1156_v47 = vld [vmem:[#allocation5 + $0xe0] ss:$8 sps:$4 sm:$0xff]   ;;  %v1157_v48 = vld [vmem:[#allocation5 + $0xf4] ss:$8 sps:$4 sm:$0xff]   ;;  %v1159_v49 = vld [vmem:[#allocation5 + $0xf0] ss:$8 sps:$4 sm:$0xff]  }
  0x5b   :  { %v1160_v50 = vld [vmem:[#allocation7] ss:$8 sps:$4 sm:$0xff]   ;;  %v1162_v51 = vld [vmem:[#allocation7 + $0x4] ss:$8 sps:$4 sm:$0xff]   ;;  %v1165_v52 = vld [vmem:[#allocation7 + $0x14] ss:$8 sps:$4 sm:$0xff]  }
  0x5c   :  { %214 = vmatpush1.bf16.msra.mxu0 %v1101_v13  ;;  %465 = vmatpush1.bf16.msra.mxu1 %v1123_v22  ;;  %v1163_v53 = vld [vmem:[#allocation7 + $0x10] ss:$8 sps:$4 sm:$0xff]   ;;  %v1168_v54 = vld [vmem:[#allocation7 + $0x24] ss:$8 sps:$4 sm:$0xff]   ;;  %v1166_v55 = vld [vmem:[#allocation7 + $0x20] ss:$8 sps:$4 sm:$0xff]  }
  0x5d   :  { %215 = vmatprep.subr.bf16.mxu0 %v1102_v15  ;;  %466 = vmatprep.subr.bf16.mxu1 %v1124_v24  ;;  %v1171_v56 = vld [vmem:[#allocation7 + $0x34] ss:$8 sps:$4 sm:$0xff]   ;;  %v1169_v57 = vld [vmem:[#allocation7 + $0x30] ss:$8 sps:$4 sm:$0xff]   ;;  %v1174_v58 = vld [vmem:[#allocation7 + $0x44] ss:$8 sps:$4 sm:$0xff]  }
  0x5e   :  { %v1172_v59 = vld [vmem:[#allocation7 + $0x40] ss:$8 sps:$4 sm:$0xff]   ;;  %v1177_v60 = vld [vmem:[#allocation7 + $0x54] ss:$8 sps:$4 sm:$0xff]   ;;  %v1175_v61 = vld [vmem:[#allocation7 + $0x50] ss:$8 sps:$4 sm:$0xff]  }
  0x5f   :  { %v1180_v62 = vld [vmem:[#allocation7 + $0x64] ss:$8 sps:$4 sm:$0xff]   ;;  %v1178_v63 = vld [vmem:[#allocation7 + $0x60] ss:$8 sps:$4 sm:$0xff]   ;;  %v1183_v0 = vld [vmem:[#allocation7 + $0x74] ss:$8 sps:$4 sm:$0xff]  }
  0x60   :  { %216 = vmatpush1.bf16.msra.mxu0 %v1104_v17  ;;  %467 = vmatpush1.bf16.msra.mxu1 %v1126_v26  ;;  %v1181_v1 = vld [vmem:[#allocation7 + $0x70] ss:$8 sps:$4 sm:$0xff]   ;;  %v1186_v2 = vld [vmem:[#allocation7 + $0x84] ss:$8 sps:$4 sm:$0xff]   ;;  %v1184_v3 = vld [vmem:[#allocation7 + $0x80] ss:$8 sps:$4 sm:$0xff]  }
  0x61   :  { %217 = vmatprep.subr.bf16.mxu0 %v1105_v19  ;;  %468 = vmatprep.subr.bf16.mxu1 %v1127_v28  ;;  %v1189_v4 = vld [vmem:[#allocation7 + $0x94] ss:$8 sps:$4 sm:$0xff]   ;;  %v1187_v5 = vld [vmem:[#allocation7 + $0x90] ss:$8 sps:$4 sm:$0xff]   ;;  %v1192_v6 = vld [vmem:[#allocation7 + $0xa4] ss:$8 sps:$4 sm:$0xff]  }
  0x62   :  { %v1190_v7 = vld [vmem:[#allocation7 + $0xa0] ss:$8 sps:$4 sm:$0xff]   ;;  %v1195_v8 = vld [vmem:[#allocation7 + $0xb4] ss:$8 sps:$4 sm:$0xff]   ;;  %v1193_v9 = vld [vmem:[#allocation7 + $0xb0] ss:$8 sps:$4 sm:$0xff]  }
  0x63   :  { %v1198_v10 = vld [vmem:[#allocation7 + $0xc4] ss:$8 sps:$4 sm:$0xff]   ;;  %v1196_v11 = vld [vmem:[#allocation7 + $0xc0] ss:$8 sps:$4 sm:$0xff]   ;;  %v1201_v12 = vld [vmem:[#allocation7 + $0xd4] ss:$8 sps:$4 sm:$0xff]  }
  0x64   :  { %218 = vmatpush1.bf16.msra.mxu0 %v1107_v21  ;;  %469 = vmatpush1.bf16.msra.mxu1 %v1129_v29  ;;  %v1199_v13 = vld [vmem:[#allocation7 + $0xd0] ss:$8 sps:$4 sm:$0xff]   ;;  %v110_v15 = vshrl.u32 %v109_v14, 7  ;;  %v107_v17 = vld [vmem:[%s1515_s2] sm:$0x3]  ;;  %s1312_s1 = scalar_lea.vmem %s944_s26, 256 }
  0x65   :  { %219 = vmatprep.subr.bf16.mxu0 %v1108_v23  ;;  %470 = vmatprep.subr.bf16.mxu1 %v1130_v30  ;;  %p1313_p4 = scmp.ne.s32.totalorder %s944_s26, %s1312_s1  ;;  %p1318_p6 = scmp.lt.s32.totalorder %s1312_s1, %s1312_s1 }
  0x66   :  { %v1476_v16 = vsub.s32 0, %v110_v15  ;;  %v1481_v18 = vsub.s32 1, %v110_v15 }
  0x67   :  { %p1319_p7 = por %p1318_p6, %p1317_p5 }
  0x68   :  { %220 = vmatpush1.bf16.msra.mxu0 %v1110_v25  ;;  %471 = vmatpush1.bf16.msra.mxu1 %v1132_v31  ;;  %v112_v19 = vrot.slane %v107_v17, %v1476_v16  ;;  %v116_v20 = vrot.slane %v107_v17, %v1481_v18 }
  0x69   :  { %472 = vmatprep.subr.bf16.mxu1 %v1133_v32  ;;  %711 = vmatprep.subr.bf16.mxu0 %v1162_v51  ;;  %p1320_p8 = pnand %p1319_p7, %p1313_p4 }
  0x6b   :  { %238 = vmatmul.mubr.bf16.vlgmr.msra.gmra.mrb[0].mxu0 %v1111_v27 }
  0x6c   :  { %473 = vmatpush1.bf16.msra.mxu1 %v1135_v33  ;;  %712 = vmatpush1.bf16.msra.mxu0 %v1160_v50  ;;  %v286_v50 = vld [vmem:[%s1517_s4] sm:$0x3] }
  0x6d   :  { %474 = vmatprep.subr.bf16.mxu1 %v1136_v34  ;;  %713 = vmatprep.subr.bf16.mxu0 %v1165_v52  ;;  %v291_v51 = vrot.slane %v286_v50, %v1476_v16  ;;  %v295_v52 = vrot.slane %v286_v50, %v1481_v18 }
  0x70   :  { %475 = vmatpush1.bf16.msra.mxu1 %v1138_v35  ;;  %714 = vmatpush1.bf16.msra.mxu0 %v1163_v53  ;;  %v1204_v35 = vld [vmem:[#allocation7 + $0xe4] ss:$8 sps:$4 sm:$0xff]  }
  0x71   :  { %476 = vmatprep.subr.bf16.mxu1 %v1139_v36  ;;  %715 = vmatprep.subr.bf16.mxu0 %v1168_v54  ;;  %v1202_v36 = vld [vmem:[#allocation7 + $0xe0] ss:$8 sps:$4 sm:$0xff]  }
  0x74   :  { %477 = vmatpush1.bf16.msra.mxu1 %v1141_v37  ;;  %716 = vmatpush1.bf16.msra.mxu0 %v1166_v55  ;;  %v1207_v37 = vld [vmem:[#allocation7 + $0xf4] ss:$8 sps:$4 sm:$0xff]  }
  0x75   :  { %478 = vmatprep.subr.bf16.mxu1 %v1142_v38  ;;  %717 = vmatprep.subr.bf16.mxu0 %v1171_v56  ;;  %v1205_v38 = vld [vmem:[#allocation7 + $0xf0] ss:$8 sps:$4 sm:$0xff]  }
  0x78   :  { %479 = vmatpush1.bf16.msra.mxu1 %v1144_v39  ;;  %718 = vmatpush1.bf16.msra.mxu0 %v1169_v57  ;;  %v1208_v39 = vld [vmem:[#allocation8 + $0x40] sm:$0xff]  }
  0x79   :  { %480 = vmatprep.subr.bf16.mxu1 %v1145_v40  ;;  %719 = vmatprep.subr.bf16.mxu0 %v1174_v58  ;;  %v1209_v40 = vld [vmem:[#allocation8] sm:$0xff]  }
  0x7c   :  { %481 = vmatpush1.bf16.msra.mxu1 %v1147_v41  ;;  %720 = vmatpush1.bf16.msra.mxu0 %v1172_v59  ;;  %v1210_v41 = vld [vmem:[#allocation8 + $0x48] sm:$0xff]  }
  0x7d   :  { %482 = vmatprep.subr.bf16.mxu1 %v1148_v42  ;;  %721 = vmatprep.subr.bf16.mxu0 %v1177_v60  ;;  %v1211_v42 = vld [vmem:[#allocation8 + $0x8] sm:$0xff]  }
  0x80   :  { %483 = vmatpush1.bf16.msra.mxu1 %v1150_v43  ;;  %722 = vmatpush1.bf16.msra.mxu0 %v1175_v61  ;;  %v1212_v43 = vld [vmem:[#allocation8 + $0x50] sm:$0xff]  }
  0x81   :  { %484 = vmatprep.subr.bf16.mxu1 %v1151_v44  ;;  %723 = vmatprep.subr.bf16.mxu0 %v1180_v62  ;;  %v1213_v44 = vld [vmem:[#allocation8 + $0x10] sm:$0xff]  }
  0x84   :  { %485 = vmatpush1.bf16.msra.mxu1 %v1153_v45  ;;  %724 = vmatpush1.bf16.msra.mxu0 %v1178_v63  ;;  %v1214_v45 = vld [vmem:[#allocation8 + $0x58] sm:$0xff]  }
  0x85   :  { %486 = vmatprep.subr.bf16.mxu1 %v1154_v46  ;;  %725 = vmatprep.subr.bf16.mxu0 %v1183_v0  ;;  %v1215_v46 = vld [vmem:[#allocation8 + $0x18] sm:$0xff]  }
  0x88   :  { %487 = vmatpush1.bf16.msra.mxu1 %v1156_v47  ;;  %726 = vmatpush1.bf16.msra.mxu0 %v1181_v1  ;;  %v1216_v47 = vld [vmem:[#allocation8 + $0x60] sm:$0xff]  }
  0x89   :  { %488 = vmatprep.subr.bf16.mxu1 %v1157_v48  ;;  %727 = vmatprep.subr.bf16.mxu0 %v1186_v2  ;;  %v1217_v48 = vld [vmem:[#allocation8 + $0x20] sm:$0xff]  }
  0x8c   :  { %489 = vmatpush1.bf16.msra.mxu1 %v1159_v49  ;;  %728 = vmatpush1.bf16.msra.mxu0 %v1184_v3  ;;  %v1218_v49 = vld [vmem:[#allocation8 + $0x68] sm:$0xff]  }
  0x8d   :  { %729 = vmatprep.subr.bf16.mxu0 %v1189_v4  ;;  %1055 = vmatprep.subr.bf16.mxu1 %v1208_v39  ;;  %v1219_v3 = vld [vmem:[#allocation8 + $0x28] sm:$0xff]   ;;  %v1220_v4 = vld [vmem:[#allocation8 + $0x70] sm:$0xff]  }
  0x90   :  { %730 = vmatpush1.bf16.msra.mxu0 %v1187_v5  ;;  %v1221_v5 = vld [vmem:[#allocation8 + $0x30] sm:$0xff]  }
  0x91   :  { %731 = vmatprep.subr.bf16.mxu0 %v1192_v6  ;;  %v1222_v6 = vld [vmem:[#allocation8 + $0x78] sm:$0xff]  }
  0x94   :  { %732 = vmatpush1.bf16.msra.mxu0 %v1190_v7  ;;  %v1223_v7 = vld [vmem:[#allocation8 + $0x38] sm:$0xff]  }
  0x95   :  { %733 = vmatprep.subr.bf16.mxu0 %v1195_v8  ;;  %v539_v8 = vld [vmem:[%s1519_s6] sm:$0x3] }
  0x98   :  { %734 = vmatpush1.bf16.msra.mxu0 %v1193_v9  ;;  %v544_v9 = vrot.slane %v539_v8, %v1476_v16  ;;  %v1038_v16 = vld [vmem:[%s1521_s8] ss:$0 sm:$0xff] }
  0x99   :  { %735 = vmatprep.subr.bf16.mxu0 %v1198_v10  ;;  %v548_v10 = vrot.slane %v539_v8, %v1481_v18 }
  0x9c   :  { %736 = vmatpush1.bf16.msra.mxu0 %v1196_v11 }
  0x9d   :  { %737 = vmatprep.subr.bf16.mxu0 %v1201_v12 }
  0xa0   :  { %738 = vmatpush1.bf16.msra.mxu0 %v1199_v13 }
  0xa1   :  { %739 = vmatprep.subr.bf16.mxu0 %v1204_v35 }
  0xa4   :  { %740 = vmatpush1.bf16.msra.mxu0 %v1202_v36 }
  0xa5   :  { %741 = vmatprep.subr.bf16.mxu0 %v1207_v37 }
  0xa8   :  { %742 = vmatpush1.bf16.msra.mxu0 %v1205_v38 }
 0x13e   :  { %v239_v21 = vpop.f32.mrb[0].mxu0 }
 0x13f   :  { %v240_v22 = vadd.f32 %v239_v21, %v112_v19  ;;  %v241_v23 = vpop.f32.mrb[1].mxu0 }
 0x140   :  { %v242_v24 = vadd.f32 %v241_v23, %v116_v20  ;;  %v243_v25 = vpop.f32.mrb[2].mxu0 }
 0x141   :  { %v244_v26 = vadd.f32 %v243_v25, %v112_v19  ;;  %v245_v27 = vpop.f32.mrb[3].mxu0  ;;  %v248_v29 = vmax.f32 %v240_v22, 0.0 }
 0x142   :  { %v246_v28 = vadd.f32 %v245_v27, %v116_v20  ;;  %v249_v31 = vmax.f32 %v242_v24, 0.0 }
 0x143   :  { %v250_v30 = vmax.f32 %v244_v26, 0.0 }
 0x144   :  { %v251_v32 = vmax.f32 %v246_v28, 0.0 }
 0x145   :  { %v252_v33 = vpack.c.bf16 %v250_v30, %v248_v29 }
 0x146   :  { %v253_v34 = vpack.c.bf16 %v251_v32, %v249_v31 }
 0x148   :  { %490 = vmatprep.mubr.bf16.mxu1 %v253_v34 }
 0x149   :  { %491 = vmatmul.mubr.bf16.vlgmr.msra.gmra.mrb[0].mxu1 %v252_v33 }
 0x14a   :  { %1056 = vmatpush3.bf16.msra.mxu1 %v1209_v40 }
 0x14b   :  { %1057 = vmatprep.subr.bf16.mxu1 %v1210_v41 }
 0x14e   :  { %1058 = vmatpush3.bf16.msra.mxu1 %v1211_v42 }
 0x14f   :  { %1059 = vmatprep.subr.bf16.mxu1 %v1212_v43 }
 0x152   :  { %1060 = vmatpush3.bf16.msra.mxu1 %v1213_v44 }
 0x153   :  { %1061 = vmatprep.subr.bf16.mxu1 %v1214_v45 }
 0x156   :  { %1062 = vmatpush3.bf16.msra.mxu1 %v1215_v46 }
 0x157   :  { %1063 = vmatprep.subr.bf16.mxu1 %v1216_v47 }
 0x15a   :  { %1064 = vmatpush3.bf16.msra.mxu1 %v1217_v48 }
 0x15b   :  { %1065 = vmatprep.subr.bf16.mxu1 %v1218_v49 }
 0x15e   :  { %1066 = vmatpush3.bf16.msra.mxu1 %v1219_v3 }
 0x15f   :  { %1067 = vmatprep.subr.bf16.mxu1 %v1220_v4 }
 0x162   :  { %1068 = vmatpush3.bf16.msra.mxu1 %v1221_v5 }
 0x163   :  { %1069 = vmatprep.subr.bf16.mxu1 %v1222_v6 }
 0x166   :  { %1070 = vmatpush3.bf16.msra.mxu1 %v1223_v7 }
 0x21c   :  { %v492_v53 = vpop.f32.mrb[0].mxu1 }
 0x21d   :  { %v493_v54 = vadd.f32 %v492_v53, %v291_v51  ;;  %v494_v55 = vpop.f32.mrb[1].mxu1 }
 0x21e   :  { %v495_v56 = vadd.f32 %v494_v55, %v295_v52  ;;  %v496_v57 = vpop.f32.mrb[2].mxu1 }
 0x21f   :  { %v497_v58 = vadd.f32 %v496_v57, %v291_v51  ;;  %v498_v59 = vpop.f32.mrb[3].mxu1  ;;  %v501_v61 = vmax.f32 %v493_v54, 0.0 }
 0x220   :  { %v499_v60 = vadd.f32 %v498_v59, %v295_v52  ;;  %v502_v63 = vmax.f32 %v495_v56, 0.0 }
 0x221   :  { %v503_v62 = vmax.f32 %v497_v58, 0.0 }
 0x222   :  { %v504_v0 = vmax.f32 %v499_v60, 0.0 }
 0x223   :  { %v505_v1 = vpack.c.bf16 %v503_v62, %v501_v61 }
 0x224   :  { %v506_v2 = vpack.c.bf16 %v504_v0, %v502_v63 }
 0x226   :  { %743 = vmatprep.mubr.bf16.mxu0 %v506_v2 }
 0x227   :  { %744 = vmatmul.mubr.bf16.vlgmr.msra.gmra.mrb[4].mxu0 %v505_v1 }
 0x2fa   :  { %v745_v11 = vpop.f32.mrb[4].mxu0 }
 0x2fb   :  { %v746_v12 = vadd.f32 %v745_v11, %v544_v9  ;;  %v747_v13 = vpop.f32.mrb[5].mxu0 }
 0x2fc   :  { %v748_v14 = vadd.f32 %v747_v13, %v548_v10  ;;  %v749_v15 = vpop.f32.mrb[6].mxu0 }
 0x2fd   :  { %v750_v17 = vadd.f32 %v749_v15, %v544_v9  ;;  %v751_v19 = vpop.f32.mrb[7].mxu0  ;;  %v754_v21 = vmax.f32 %v746_v12, 0.0 }
 0x2fe   :  { %v752_v20 = vadd.f32 %v751_v19, %v548_v10  ;;  %v755_v23 = vmax.f32 %v748_v14, 0.0 }
 0x2ff   :  { %v756_v22 = vmax.f32 %v750_v17, 0.0 }
 0x300   :  { %v757_v24 = vmax.f32 %v752_v20, 0.0 }
 0x301   :  { %v758_v25 = vpack.c.bf16 %v756_v22, %v754_v21 }
 0x302   :  { %v759_v26 = vpack.c.bf16 %v757_v24, %v755_v23 }
 0x304   :  { %927 = vmatprep.mubr.bf16.mxu1 %v759_v26 }
 0x305   :  { %928 = vmatmul.mubr.bf16.vlgmr.msra.gmra.mrb[4].mxu1 %v758_v25 }
 0x3d8   :  { %v1071_v27 = vpop.f32.mrb[4].mxu1 }
 0x3d9   :  { %v1072_v18 = vpop.f32.mrb[5].mxu1 }
 0x3da   :  { %v1073_v28 = vadd.f32 %v1072_v18, %v1071_v27  ;;  %v1074_v29 = vpop.f32.mrb[6].mxu1 }
 0x3db   :  { %v1075_v30 = vpop.f32.mrb[7].mxu1 }
 0x3dc   :  { %v930_v31 = vadd.f32 %v1073_v28, %v1038_v16  ;;  %v1076_v32 = vadd.f32 %v1075_v30, %v1074_v29 }
 0x3de   :  { %936 = vst [vmem:[#allocation10] sm:$0xff] %v930_v31  ;;  %v933_v33 = vadd.f32 %v1076_v32, %v1038_v16 }
 0x3e0   :  { %937 = vst [vmem:[#allocation10 + $0x8] sm:$0xff] %v933_v33 }
 0x3e1   :  { %1323 = shalt.err (!%p1320_p8)
}
 0x3e2   :  { %s1324_s27 = scalar_lea.hbm %s1522_s9, 256 }
 0x3e3   :  { %p1325_p9 = scmp.ne.s32.totalorder %s1522_s9, %s1324_s27  ;;  %p1328_p10 = scmp.lt.u32.totalorder %s1324_s27, %s1522_s9 }
 0x3e5   :  { %p1330_p11 = pnand %p1328_p10, %p1325_p9 }
 0x3e7   :  { %1333 = shalt.err (!%p1330_p11)
}
 0x3e8   :  { %949 = dma.vmem_to_hbm [thread:$0]  %s944_s26, 256, %s1522_s9, [#allocation4], %s1344_s21, %s1344_s21, %s1345_s22  }
 0x3e9   :  { %1340 = dma.done.wait [#allocation4], 256  }
 0x3ea   :  { %1341 = vsyncadd [#allocation4], 4294967040 }
 0x3eb   :  { %953 = vsyncpa [#allocation3], 1 }
 0x3ec   :  { %954 = vsyncpa [#allocation6], 1 }
 0x3ed   :  { %955 = vsyncpa [#allocation9], 1 }
 0x3ee   :  { %956 = vsyncpa [#allocation4], 1 }

</bundles_post_ra>
